<compile_context>
chip_gen: v6e
topology: v6e:2x2x1
jax: 0.10.0
libtpu: 0.0.40
codegen_flags: <defaults>
</compile_context>

<pallas_src>
import functools

import jax
import jax.numpy as jnp
from jax.experimental import pallas as pl
from jax.experimental.pallas import tpu as pltpu


def _round_up(x, m):
    return -(-x // m) * m


def _wdice_kernel(preds_ref, targets_ref, w_ref,
                  inter_ref, sump_ref, sumt_ref, cen_ref, ced_ref,
                  inter_acc, sump_acc, sumt_acc, cen_acc, ced_acc,
                  *, n_hw, tile, hw, needs_mask):
    # preds_ref:   (1, C, T) logits in their native dtype
    # targets_ref: (1, 1, T) int32 labels
    # w_ref:       (C, 1)    f32 CE class weights
    # inter/sump/sumt_ref: (1, 1, C, 1) per-(n, split) partial sums
    # cen/ced_ref:         (1, 1, 1, 1) CE weighted-NLL sum / weight sum
    h = pl.program_id(2)

    @pl.when(h == 0)
    def _init():
        inter_acc[...] = jnp.zeros_like(inter_acc)
        sump_acc[...] = jnp.zeros_like(sump_acc)
        sumt_acc[...] = jnp.zeros_like(sumt_acc)
        cen_acc[...] = jnp.zeros_like(cen_acc)
        ced_acc[...] = jnp.zeros_like(ced_acc)

    # Native-dtype load; upcast once in vregs (no host-side f32 copy of preds).
    logits = preds_ref[0].astype(jnp.float32)                 # (C, T)
    labels = targets_ref[0]                                   # (1, T)
    w = w_ref[...]                                            # (C, 1)

    # Channel softmax across the C sublane rows (numerically stable).
    m = jnp.max(logits, axis=0, keepdims=True)                # (1, T)
    e = jnp.exp(logits - m)                                   # (C, T)
    denom = jnp.sum(e, axis=0, keepdims=True)                 # (1, T)
    probs = e * pl.reciprocal(denom, approx=True)             # (C, T)  EUP vrcp

    # Boolean label mask along the class (sublane) axis (no f32 one-hot).
    cls = jax.lax.broadcasted_iota(jnp.int32, logits.shape, 0)
    mask = cls == labels                                      # (C, T) bool

    if needs_mask:
        s = pl.program_id(1)
        pix0 = (s * n_hw + h) * tile
        lane = jax.lax.broadcasted_iota(jnp.int32, (1, tile), 1)
        valid = (pix0 + lane) < hw                            # (1, T) bool
        mask = jnp.logical_and(mask, valid)
        probs = jnp.where(valid, probs, 0.0)                  # mask padded lanes out of sum_p

    # Per-class spatial partial sums (lane-axis reduce -> (C, 1)).
    inter_acc[...] += jnp.sum(jnp.where(mask, probs, 0.0), axis=1, keepdims=True)
    sump_acc[...] += jnp.sum(probs, axis=1, keepdims=True)
    sumt_acc[...] += jnp.sum(jnp.where(mask, 1.0, 0.0), axis=1, keepdims=True)

    # Weighted cross-entropy partial sums (exact log-sum-exp path).
    lse = m + jnp.log(denom)                                              # (1, T)
    logit_t = jnp.sum(jnp.where(mask, logits, 0.0), axis=0, keepdims=True)  # (1, T)
    w_pix = jnp.sum(jnp.where(mask, w, 0.0), axis=0, keepdims=True)          # (1, T)
    ce_term = w_pix * (lse - logit_t)
    if needs_mask:
        # Kill possible NaN/Inf from garbage data in clamped/partial blocks.
        ce_term = jnp.where(valid, ce_term, 0.0)
    cen_acc[...] += jnp.sum(ce_term, axis=1, keepdims=True)
    ced_acc[...] += jnp.sum(w_pix, axis=1, keepdims=True)

    @pl.when(h == pl.num_programs(2) - 1)
    def _fin():
        inter_ref[0, 0] = inter_acc[...]
        sump_ref[0, 0] = sump_acc[...]
        sumt_ref[0, 0] = sumt_acc[...]
        cen_ref[0, 0] = cen_acc[...]
        ced_ref[0, 0] = ced_acc[...]


# --- Tile sizing against the sublane-PADDED, double-buffered VMEM footprint ---
_TGT_SUBLANES = 8              # (1, 1, tile) int32 block pads its sublane dim 1 -> 8
_INPUT_VMEM_BUDGET = 36 << 20  # total for double-buffered preds + targets blocks
_MAX_REAL_PRED_BYTES = 8 << 20 # keep each preds DMA in the ~2-8 MiB sweet spot
_VMEM_MARGIN = 6 << 20         # outputs, scratch, compiler-internal scratch


def _padded_input_bytes_per_pixel(c, pred_dtype):
    itemsize = jnp.dtype(pred_dtype).itemsize
    sublane = max(8, 32 // itemsize)          # f32: 8, bf16: 16, int8: 32
    c_pad = _round_up(c, sublane)             # preds sublane padding when C % sublane != 0
    return c_pad * itemsize + _TGT_SUBLANES * 4


def _pick_hw_tile(hw, c, pred_dtype, n_splits):
    """Largest multiple-of-128 tile whose padded, double-buffered inputs fit the budget."""
    per_pixel = _padded_input_bytes_per_pixel(c, pred_dtype)
    itemsize = jnp.dtype(pred_dtype).itemsize
    max_tile_budget = _INPUT_VMEM_BUDGET // (2 * per_pixel)        # x2: double buffering
    max_tile_real = _MAX_REAL_PRED_BYTES // max(1, c * itemsize)   # ~2-8 MiB real data/step
    tile = max(128, (min(max_tile_budget, max_tile_real) // 128) * 128)
    hw_per_split = _round_up(-(-hw // n_splits), 128)              # never exceed the data
    return min(tile, hw_per_split)


def weighted_dice_loss(preds, targets, class_weights):
    """preds: (N, C, H, W) float logits (any float dtype); targets: (N, H, W) int labels;
    class_weights: (C,) CE class weights (already (1-b)/(1-b**counts)).

    Returns scalar: weighted CE + (1 - mean per-(n, c) dice coefficient).
    """
    N, C, H, W = preds.shape
    HW = H * W

    # NCHW is already channels-major / pixels-minor: metadata-only reshapes, no
    # transpose and no dtype-cast pass over HBM for preds.
    preds_p = preds.reshape(N, C, HW)
    targets_p = targets.reshape(N, 1, HW).astype(jnp.int32)
    w_p = class_weights.reshape(C, 1).astype(jnp.float32)

    # Split the spatial reduction when N == 1 so both v7x TensorCores get a
    # "parallel" unit of work; S == 1 (no-op) otherwise.
    S = 2 if N == 1 else 1
    tile = _pick_hw_tile(HW, C, preds_p.dtype, S)
    n_tiles = -(-HW // tile)
    if n_tiles < S:
        S = 1
    n_hw = -(-n_tiles // S)
    needs_mask = (S * n_hw * tile) != HW

    def pix_block(n, s, h):
        t = s * n_hw + h
        if S * n_hw > n_tiles:                  # compile-time check
            t = jnp.minimum(t, n_tiles - 1)     # clamp fully-OOB tail tiles (masked to zero)
        return (n, 0, t)

    per_pixel = _padded_input_bytes_per_pixel(C, preds_p.dtype)
    vmem_limit = int(min(48 << 20, max(16 << 20, 2 * per_pixel * tile + _VMEM_MARGIN)))

    kernel = functools.partial(_wdice_kernel, n_hw=n_hw, tile=tile, hw=HW,
                               needs_mask=needs_mask)

    inter, sump, sumt, cen, ced = pl.pallas_call(
        kernel,
        out_shape=(
            jax.ShapeDtypeStruct((N, S, C, 1), jnp.float32),
            jax.ShapeDtypeStruct((N, S, C, 1), jnp.float32),
            jax.ShapeDtypeStruct((N, S, C, 1), jnp.float32),
            jax.ShapeDtypeStruct((N, S, 1, 1), jnp.float32),
            jax.ShapeDtypeStruct((N, S, 1, 1), jnp.float32),
        ),
        grid_spec=pltpu.PrefetchScalarGridSpec(
            num_scalar_prefetch=0,
            grid=(N, S, n_hw),
            in_specs=[
                pl.BlockSpec((1, C, tile), pix_block),
                pl.BlockSpec((1, 1, tile), pix_block),
                pl.BlockSpec((C, 1), lambda n, s, h: (0, 0)),
            ],
            out_specs=[
                pl.BlockSpec((1, 1, C, 1), lambda n, s, h: (n, s, 0, 0)),
                pl.BlockSpec((1, 1, C, 1), lambda n, s, h: (n, s, 0, 0)),
                pl.BlockSpec((1, 1, C, 1), lambda n, s, h: (n, s, 0, 0)),
                pl.BlockSpec((1, 1, 1, 1), lambda n, s, h: (n, s, 0, 0)),
                pl.BlockSpec((1, 1, 1, 1), lambda n, s, h: (n, s, 0, 0)),
            ],
            scratch_shapes=[
                pltpu.VMEM((C, 1), jnp.float32),   # inter
                pltpu.VMEM((C, 1), jnp.float32),   # sum(probs)
                pltpu.VMEM((C, 1), jnp.float32),   # sum(one-hot)
                pltpu.VMEM((1, 1), jnp.float32),   # CE numerator
                pltpu.VMEM((1, 1), jnp.float32),   # CE weight sum
            ],
        ),
        compiler_params=pltpu.CompilerParams(
            dimension_semantics=("parallel", "parallel", "arbitrary"),
            vmem_limit_bytes=vmem_limit,
        ),
    )(preds_p, targets_p, w_p)

    # Tiny final reductions stay in plain JAX.
    inter_n = jnp.sum(inter[..., 0], axis=1)        # (N, C)
    sump_n = jnp.sum(sump[..., 0], axis=1)
    sumt_n = jnp.sum(sumt[..., 0], axis=1)
    dice = 2.0 * inter_n / (sump_n + sumt_n)
    ce = jnp.sum(cen) / jnp.sum(ced)
    return ce + (1.0 - jnp.mean(dice))


if __name__ == "__main__":
    key = jax.random.PRNGKey(0)
    k_preds, k_targets = jax.random.split(key)

    N, C, H, W = 2, 4, 16, 16
    beta = 0.9
    # per-class sample counts handed to WeightedDiceLoss.__init__ as `weights`
    class_counts = jnp.array([100.0, 200.0, 50.0, 25.0], dtype=jnp.float32)
    class_w = (1.0 - beta) / (1.0 - beta ** class_counts)     # CE class weights

    preds = jax.random.normal(k_preds, (N, C, H, W), dtype=jnp.float32)
    targets = jax.random.randint(k_targets, (N, H, W), 0, C, dtype=jnp.int32)
    # Guarantee class C-1 appears (matches F.one_hot's inferred num_classes == C).
    targets = targets.at[0, 0, 0].set(C - 1)

    loss = jax.jit(weighted_dice_loss)(preds, targets, class_w)
    jax.block_until_ready(loss)

    # Pure-JAX reference check.
    logp = jax.nn.log_softmax(preds, axis=1)
    probs_ref = jnp.exp(logp)
    oh = jnp.transpose(jax.nn.one_hot(targets, C, dtype=jnp.float32), (0, 3, 1, 2))
    w_pix = class_w[targets]
    nll = -jnp.sum(logp * oh, axis=1)
    ce_ref = jnp.sum(w_pix * nll) / jnp.sum(w_pix)
    dice_ref = 2.0 * jnp.sum(probs_ref * oh, axis=(2, 3)) / (
        jnp.sum(probs_ref, axis=(2, 3)) + jnp.sum(oh, axis=(2, 3)))
    loss_ref = ce_ref + (1.0 - jnp.mean(dice_ref))

    # Tolerance accounts for the approximate (EUP) reciprocal in the softmax denom.
    assert jnp.allclose(loss, loss_ref, atol=2e-3, rtol=2e-3), (loss, loss_ref)

    print("KERNEL_OK")
</pallas_src>

<mosaic_0001>
module attributes {stable_mosaic.version = 11 : i64} {
  func.func @_wdice_kernel(%arg0: i32, %arg1: i32, %arg2: i32, %arg3: memref<1x4x256xf32, #tpu.memory_space<vmem>>, %arg4: memref<1x1x256xi32, #tpu.memory_space<vmem>>, %arg5: memref<4x1xf32, #tpu.memory_space<vmem>>, %arg6: memref<1x1x4x1xf32, #tpu.memory_space<vmem>>, %arg7: memref<1x1x4x1xf32, #tpu.memory_space<vmem>>, %arg8: memref<1x1x4x1xf32, #tpu.memory_space<vmem>>, %arg9: memref<1x1x1x1xf32, #tpu.memory_space<vmem>>, %arg10: memref<1x1x1x1xf32, #tpu.memory_space<vmem>>, %arg11: memref<4x1xf32, #tpu.memory_space<vmem>>, %arg12: memref<4x1xf32, #tpu.memory_space<vmem>>, %arg13: memref<4x1xf32, #tpu.memory_space<vmem>>, %arg14: memref<1x1xf32, #tpu.memory_space<vmem>>, %arg15: memref<1x1xf32, #tpu.memory_space<vmem>>) attributes {dimension_semantics = [#tpu.dimension_semantics<parallel>, #tpu.dimension_semantics<parallel>, #tpu.dimension_semantics<arbitrary>], iteration_bounds = array<i64: 2, 1, 1>, scalar_prefetch = 0 : i64, scratch_operands = 5 : i64, tpu.core_type = #tpu.core_type<tc>, window_params = [{transform_indices = @transform_0, window_bounds = array<i64: 1, 4, 256>}, {transform_indices = @transform_1, window_bounds = array<i64: 1, 1, 256>}, {pipeline_mode = #tpu.pipeline_mode<synchronous>, transform_indices = @transform_2, window_bounds = array<i64: 4, 1>}, {transform_indices = @transform_3, window_bounds = array<i64: 1, 1, 4, 1>}, {transform_indices = @transform_4, window_bounds = array<i64: 1, 1, 4, 1>}, {transform_indices = @transform_5, window_bounds = array<i64: 1, 1, 4, 1>}, {transform_indices = @transform_6, window_bounds = array<i64: 1, 1, 1, 1>}, {transform_indices = @transform_7, window_bounds = array<i64: 1, 1, 1, 1>}]} {
    %c0_i32 = arith.constant 0 : i32
    %0 = arith.cmpi eq, %arg2, %c0_i32 : i32
    %1 = arith.extui %0 : i1 to i32
    %c0_i32_0 = arith.constant 0 : i32
    %2 = arith.cmpi ne, %1, %c0_i32_0 : i32
    scf.if %2 {
      %cst_43 = arith.constant 0.000000e+00 : f32
      %68 = vector.broadcast %cst_43 : f32 to vector<4x1xf32>
      %c0_44 = arith.constant 0 : index
      %c0_45 = arith.constant 0 : index
      %69 = vector.load %arg11[%c0_44, %c0_45] : memref<4x1xf32, #tpu.memory_space<vmem>>, vector<4x1xf32>
      tpu.vector_store %arg11[%c0_44, %c0_45], %68 {strides = array<i32>} : memref<4x1xf32, #tpu.memory_space<vmem>>, vector<4x1xf32>,
      %cst_46 = arith.constant 0.000000e+00 : f32
      %70 = vector.broadcast %cst_46 : f32 to vector<4x1xf32>
      %c0_47 = arith.constant 0 : index
      %c0_48 = arith.constant 0 : index
      %71 = vector.load %arg12[%c0_47, %c0_48] : memref<4x1xf32, #tpu.memory_space<vmem>>, vector<4x1xf32>
      tpu.vector_store %arg12[%c0_47, %c0_48], %70 {strides = array<i32>} : memref<4x1xf32, #tpu.memory_space<vmem>>, vector<4x1xf32>,
      %cst_49 = arith.constant 0.000000e+00 : f32
      %72 = vector.broadcast %cst_49 : f32 to vector<4x1xf32>
      %c0_50 = arith.constant 0 : index
      %c0_51 = arith.constant 0 : index
      %73 = vector.load %arg13[%c0_50, %c0_51] : memref<4x1xf32, #tpu.memory_space<vmem>>, vector<4x1xf32>
      tpu.vector_store %arg13[%c0_50, %c0_51], %72 {strides = array<i32>} : memref<4x1xf32, #tpu.memory_space<vmem>>, vector<4x1xf32>,
      %cst_52 = arith.constant 0.000000e+00 : f32
      %74 = vector.broadcast %cst_52 : f32 to vector<1x1xf32>
      %c0_53 = arith.constant 0 : index
      %c0_54 = arith.constant 0 : index
      %75 = vector.load %arg14[%c0_53, %c0_54] : memref<1x1xf32, #tpu.memory_space<vmem>>, vector<1x1xf32>
      tpu.vector_store %arg14[%c0_53, %c0_54], %74 {strides = array<i32>} : memref<1x1xf32, #tpu.memory_space<vmem>>, vector<1x1xf32>,
      %cst_55 = arith.constant 0.000000e+00 : f32
      %76 = vector.broadcast %cst_55 : f32 to vector<1x1xf32>
      %c0_56 = arith.constant 0 : index
      %c0_57 = arith.constant 0 : index
      %77 = vector.load %arg15[%c0_56, %c0_57] : memref<1x1xf32, #tpu.memory_space<vmem>>, vector<1x1xf32>
      tpu.vector_store %arg15[%c0_56, %c0_57], %76 {strides = array<i32>} : memref<1x1xf32, #tpu.memory_space<vmem>>, vector<1x1xf32>,
    } else {
    }
    %c0 = arith.constant 0 : index
    %c0_1 = arith.constant 0 : index
    %c0_2 = arith.constant 0 : index
    %3 = vector.load %arg3[%c0, %c0_1, %c0_2] : memref<1x4x256xf32, #tpu.memory_space<vmem>>, vector<1x4x256xf32>
    %4 = vector.shape_cast %3 : vector<1x4x256xf32> to vector<4x256xf32>
    %c0_3 = arith.constant 0 : index
    %c0_4 = arith.constant 0 : index
    %c0_5 = arith.constant 0 : index
    %5 = vector.load %arg4[%c0_3, %c0_4, %c0_5] : memref<1x1x256xi32, #tpu.memory_space<vmem>>, vector<1x1x256xi32>
    %6 = vector.shape_cast %5 : vector<1x1x256xi32> to vector<1x256xi32>
    %c0_6 = arith.constant 0 : index
    %c0_7 = arith.constant 0 : index
    %7 = vector.load %arg5[%c0_6, %c0_7] : memref<4x1xf32, #tpu.memory_space<vmem>>, vector<4x1xf32>
    %cst = arith.constant dense<0xFF800000> : vector<256xf32>
    %8 = vector.multi_reduction <maximumf>, %4, %cst [0] : vector<4x256xf32> to vector<256xf32>
    %9 = vector.shape_cast %8 : vector<256xf32> to vector<1x256xf32>
    %10 = vector.broadcast %9 : vector<1x256xf32> to vector<4x256xf32>
    %11 = arith.subf %4, %10 : vector<4x256xf32>
    %12 = math.exp %11 : vector<4x256xf32>
    %cst_8 = arith.constant dense<0.000000e+00> : vector<256xf32>
    %13 = vector.multi_reduction <add>, %12, %cst_8 [0] : vector<4x256xf32> to vector<256xf32>
    %14 = vector.shape_cast %13 : vector<256xf32> to vector<1x256xf32>
    %15 = tpu.reciprocal %14 {approx = true} : vector<1x256xf32> -> vector<1x256xf32>
    %16 = vector.broadcast %15 : vector<1x256xf32> to vector<4x256xf32>
    %17 = arith.mulf %12, %16 : vector<4x256xf32>
    %18 = tpu.iota {dimensions = array<i32: 0>} : vector<4x256xi32>
    %19 = vector.broadcast %6 : vector<1x256xi32> to vector<4x256xi32>
    %20 = arith.cmpi eq, %18, %19 : vector<4x256xi32>
    %c0_9 = arith.constant 0 : index
    %c0_10 = arith.constant 0 : index
    %21 = vector.load %arg11[%c0_9, %c0_10] : memref<4x1xf32, #tpu.memory_space<vmem>>, vector<4x1xf32>
    %cst_11 = arith.constant 0.000000e+00 : f32
    %22 = vector.broadcast %cst_11 : f32 to vector<4x256xf32>
    %23 = arith.select %20, %17, %22 : vector<4x256xi1>, vector<4x256xf32>
    %cst_12 = arith.constant dense<0.000000e+00> : vector<4xf32>
    %24 = vector.multi_reduction <add>, %23, %cst_12 [1] : vector<4x256xf32> to vector<4xf32>
    %25 = vector.shape_cast %24 : vector<4xf32> to vector<4x1xf32>
    %26 = arith.addf %21, %25 : vector<4x1xf32>
    %c0_13 = arith.constant 0 : index
    %c0_14 = arith.constant 0 : index
    %27 = vector.load %arg11[%c0_13, %c0_14] : memref<4x1xf32, #tpu.memory_space<vmem>>, vector<4x1xf32>
    tpu.vector_store %arg11[%c0_13, %c0_14], %26 {strides = array<i32>} : memref<4x1xf32, #tpu.memory_space<vmem>>, vector<4x1xf32>,
    %c0_15 = arith.constant 0 : index
    %c0_16 = arith.constant 0 : index
    %28 = vector.load %arg12[%c0_15, %c0_16] : memref<4x1xf32, #tpu.memory_space<vmem>>, vector<4x1xf32>
    %cst_17 = arith.constant dense<0.000000e+00> : vector<4xf32>
    %29 = vector.multi_reduction <add>, %17, %cst_17 [1] : vector<4x256xf32> to vector<4xf32>
    %30 = vector.shape_cast %29 : vector<4xf32> to vector<4x1xf32>
    %31 = arith.addf %28, %30 : vector<4x1xf32>
    %c0_18 = arith.constant 0 : index
    %c0_19 = arith.constant 0 : index
    %32 = vector.load %arg12[%c0_18, %c0_19] : memref<4x1xf32, #tpu.memory_space<vmem>>, vector<4x1xf32>
    tpu.vector_store %arg12[%c0_18, %c0_19], %31 {strides = array<i32>} : memref<4x1xf32, #tpu.memory_space<vmem>>, vector<4x1xf32>,
    %c0_20 = arith.constant 0 : index
    %c0_21 = arith.constant 0 : index
    %33 = vector.load %arg13[%c0_20, %c0_21] : memref<4x1xf32, #tpu.memory_space<vmem>>, vector<4x1xf32>
    %cst_22 = arith.constant 1.000000e+00 : f32
    %cst_23 = arith.constant 0.000000e+00 : f32
    %34 = vector.broadcast %cst_22 : f32 to vector<4x256xf32>
    %35 = vector.broadcast %cst_23 : f32 to vector<4x256xf32>
    %36 = arith.select %20, %34, %35 : vector<4x256xi1>, vector<4x256xf32>
    %cst_24 = arith.constant dense<0.000000e+00> : vector<4xf32>
    %37 = vector.multi_reduction <add>, %36, %cst_24 [1] : vector<4x256xf32> to vector<4xf32>
    %38 = vector.shape_cast %37 : vector<4xf32> to vector<4x1xf32>
    %39 = arith.addf %33, %38 : vector<4x1xf32>
    %c0_25 = arith.constant 0 : index
    %c0_26 = arith.constant 0 : index
    %40 = vector.load %arg13[%c0_25, %c0_26] : memref<4x1xf32, #tpu.memory_space<vmem>>, vector<4x1xf32>
    tpu.vector_store %arg13[%c0_25, %c0_26], %39 {strides = array<i32>} : memref<4x1xf32, #tpu.memory_space<vmem>>, vector<4x1xf32>,
    %41 = math.log %14 : vector<1x256xf32>
    %42 = arith.addf %9, %41 : vector<1x256xf32>
    %cst_27 = arith.constant 0.000000e+00 : f32
    %43 = vector.broadcast %cst_27 : f32 to vector<4x256xf32>
    %44 = arith.select %20, %4, %43 : vector<4x256xi1>, vector<4x256xf32>
    %cst_28 = arith.constant dense<0.000000e+00> : vector<256xf32>
    %45 = vector.multi_reduction <add>, %44, %cst_28 [0] : vector<4x256xf32> to vector<256xf32>
    %46 = vector.shape_cast %45 : vector<256xf32> to vector<1x256xf32>
    %cst_29 = arith.constant 0.000000e+00 : f32
    %47 = vector.shape_cast %7 : vector<4x1xf32> to vector<4x1xf32>
    %48 = vector.broadcast %47 : vector<4x1xf32> to vector<4x256xf32>
    %49 = vector.broadcast %cst_29 : f32 to vector<4x256xf32>
    %50 = arith.select %20, %48, %49 : vector<4x256xi1>, vector<4x256xf32>
    %cst_30 = arith.constant dense<0.000000e+00> : vector<256xf32>
    %51 = vector.multi_reduction <add>, %50, %cst_30 [0] : vector<4x256xf32> to vector<256xf32>
    %52 = vector.shape_cast %51 : vector<256xf32> to vector<1x256xf32>
    %53 = arith.subf %42, %46 : vector<1x256xf32>
    %54 = arith.mulf %52, %53 : vector<1x256xf32>
    %c0_31 = arith.constant 0 : index
    %c0_32 = arith.constant 0 : index
    %55 = vector.load %arg14[%c0_31, %c0_32] : memref<1x1xf32, #tpu.memory_space<vmem>>, vector<1x1xf32>
    %cst_33 = arith.constant dense<0.000000e+00> : vector<1xf32>
    %56 = vector.multi_reduction <add>, %54, %cst_33 [1] : vector<1x256xf32> to vector<1xf32>
    %57 = vector.shape_cast %56 : vector<1xf32> to vector<1x1xf32>
    %58 = arith.addf %55, %57 : vector<1x1xf32>
    %c0_34 = arith.constant 0 : index
    %c0_35 = arith.constant 0 : index
    %59 = vector.load %arg14[%c0_34, %c0_35] : memref<1x1xf32, #tpu.memory_space<vmem>>, vector<1x1xf32>
    tpu.vector_store %arg14[%c0_34, %c0_35], %58 {strides = array<i32>} : memref<1x1xf32, #tpu.memory_space<vmem>>, vector<1x1xf32>,
    %c0_36 = arith.constant 0 : index
    %c0_37 = arith.constant 0 : index
    %60 = vector.load %arg15[%c0_36, %c0_37] : memref<1x1xf32, #tpu.memory_space<vmem>>, vector<1x1xf32>
    %cst_38 = arith.constant dense<0.000000e+00> : vector<1xf32>
    %61 = vector.multi_reduction <add>, %52, %cst_38 [1] : vector<1x256xf32> to vector<1xf32>
    %62 = vector.shape_cast %61 : vector<1xf32> to vector<1x1xf32>
    %63 = arith.addf %60, %62 : vector<1x1xf32>
    %c0_39 = arith.constant 0 : index
    %c0_40 = arith.constant 0 : index
    %64 = vector.load %arg15[%c0_39, %c0_40] : memref<1x1xf32, #tpu.memory_space<vmem>>, vector<1x1xf32>
    tpu.vector_store %arg15[%c0_39, %c0_40], %63 {strides = array<i32>} : memref<1x1xf32, #tpu.memory_space<vmem>>, vector<1x1xf32>,
    %c0_i32_41 = arith.constant 0 : i32
    %65 = arith.cmpi eq, %arg2, %c0_i32_41 : i32
    %66 = arith.extui %65 : i1 to i32
    %c0_i32_42 = arith.constant 0 : i32
    %67 = arith.cmpi ne, %66, %c0_i32_42 : i32
    scf.if %67 {
      %c0_43 = arith.constant 0 : index
      %c0_44 = arith.constant 0 : index
      %68 = vector.load %arg11[%c0_43, %c0_44] : memref<4x1xf32, #tpu.memory_space<vmem>>, vector<4x1xf32>
      %c0_45 = arith.constant 0 : index
      %c0_46 = arith.constant 0 : index
      %c0_47 = arith.constant 0 : index
      %c0_48 = arith.constant 0 : index
      %69 = vector.load %arg6[%c0_45, %c0_46, %c0_47, %c0_48] : memref<1x1x4x1xf32, #tpu.memory_space<vmem>>, vector<1x1x4x1xf32>
      %70 = vector.shape_cast %69 : vector<1x1x4x1xf32> to vector<4x1xf32>
      %71 = vector.shape_cast %68 : vector<4x1xf32> to vector<1x1x4x1xf32>
      tpu.vector_store %arg6[%c0_45, %c0_46, %c0_47, %c0_48], %71 {strides = array<i32>} : memref<1x1x4x1xf32, #tpu.memory_space<vmem>>, vector<1x1x4x1xf32>,
      %c0_49 = arith.constant 0 : index
      %c0_50 = arith.constant 0 : index
      %72 = vector.load %arg12[%c0_49, %c0_50] : memref<4x1xf32, #tpu.memory_space<vmem>>, vector<4x1xf32>
      %c0_51 = arith.constant 0 : index
      %c0_52 = arith.constant 0 : index
      %c0_53 = arith.constant 0 : index
      %c0_54 = arith.constant 0 : index
      %73 = vector.load %arg7[%c0_51, %c0_52, %c0_53, %c0_54] : memref<1x1x4x1xf32, #tpu.memory_space<vmem>>, vector<1x1x4x1xf32>
      %74 = vector.shape_cast %73 : vector<1x1x4x1xf32> to vector<4x1xf32>
      %75 = vector.shape_cast %72 : vector<4x1xf32> to vector<1x1x4x1xf32>
      tpu.vector_store %arg7[%c0_51, %c0_52, %c0_53, %c0_54], %75 {strides = array<i32>} : memref<1x1x4x1xf32, #tpu.memory_space<vmem>>, vector<1x1x4x1xf32>,
      %c0_55 = arith.constant 0 : index
      %c0_56 = arith.constant 0 : index
      %76 = vector.load %arg13[%c0_55, %c0_56] : memref<4x1xf32, #tpu.memory_space<vmem>>, vector<4x1xf32>
      %c0_57 = arith.constant 0 : index
      %c0_58 = arith.constant 0 : index
      %c0_59 = arith.constant 0 : index
      %c0_60 = arith.constant 0 : index
      %77 = vector.load %arg8[%c0_57, %c0_58, %c0_59, %c0_60] : memref<1x1x4x1xf32, #tpu.memory_space<vmem>>, vector<1x1x4x1xf32>
      %78 = vector.shape_cast %77 : vector<1x1x4x1xf32> to vector<4x1xf32>
      %79 = vector.shape_cast %76 : vector<4x1xf32> to vector<1x1x4x1xf32>
      tpu.vector_store %arg8[%c0_57, %c0_58, %c0_59, %c0_60], %79 {strides = array<i32>} : memref<1x1x4x1xf32, #tpu.memory_space<vmem>>, vector<1x1x4x1xf32>,
      %c0_61 = arith.constant 0 : index
      %c0_62 = arith.constant 0 : index
      %80 = vector.load %arg14[%c0_61, %c0_62] : memref<1x1xf32, #tpu.memory_space<vmem>>, vector<1x1xf32>
      %c0_63 = arith.constant 0 : index
      %c0_64 = arith.constant 0 : index
      %c0_65 = arith.constant 0 : index
      %c0_66 = arith.constant 0 : index
      %81 = vector.load %arg9[%c0_63, %c0_64, %c0_65, %c0_66] : memref<1x1x1x1xf32, #tpu.memory_space<vmem>>, vector<1x1x1x1xf32>
      %82 = vector.shape_cast %81 : vector<1x1x1x1xf32> to vector<1x1xf32>
      %83 = vector.shape_cast %80 : vector<1x1xf32> to vector<1x1x1x1xf32>
      tpu.vector_store %arg9[%c0_63, %c0_64, %c0_65, %c0_66], %83 {strides = array<i32>} : memref<1x1x1x1xf32, #tpu.memory_space<vmem>>, vector<1x1x1x1xf32>,
      %c0_67 = arith.constant 0 : index
      %c0_68 = arith.constant 0 : index
      %84 = vector.load %arg15[%c0_67, %c0_68] : memref<1x1xf32, #tpu.memory_space<vmem>>, vector<1x1xf32>
      %c0_69 = arith.constant 0 : index
      %c0_70 = arith.constant 0 : index
      %c0_71 = arith.constant 0 : index
      %c0_72 = arith.constant 0 : index
      %85 = vector.load %arg10[%c0_69, %c0_70, %c0_71, %c0_72] : memref<1x1x1x1xf32, #tpu.memory_space<vmem>>, vector<1x1x1x1xf32>
      %86 = vector.shape_cast %85 : vector<1x1x1x1xf32> to vector<1x1xf32>
      %87 = vector.shape_cast %84 : vector<1x1xf32> to vector<1x1x1x1xf32>
      tpu.vector_store %arg10[%c0_69, %c0_70, %c0_71, %c0_72], %87 {strides = array<i32>} : memref<1x1x1x1xf32, #tpu.memory_space<vmem>>, vector<1x1x1x1xf32>,
    } else {
    }
    return
  }
  func.func @transform_0(%arg0: i32, %arg1: i32, %arg2: i32) -> (i32, i32, i32) {
    %c1_i32 = arith.constant 1 : i32
    %0 = arith.muli %arg1, %c1_i32 : i32
    %1 = arith.addi %0, %arg2 : i32
    %c0_i32 = arith.constant 0 : i32
    %c0_i32_0 = arith.constant 0 : i32
    return %arg0, %c0_i32, %1 : i32, i32, i32
  }
  func.func @transform_1(%arg0: i32, %arg1: i32, %arg2: i32) -> (i32, i32, i32) {
    %c1_i32 = arith.constant 1 : i32
    %0 = arith.muli %arg1, %c1_i32 : i32
    %1 = arith.addi %0, %arg2 : i32
    %c0_i32 = arith.constant 0 : i32
    %c0_i32_0 = arith.constant 0 : i32
    return %arg0, %c0_i32, %1 : i32, i32, i32
  }
  func.func @transform_2(%arg0: i32, %arg1: i32, %arg2: i32) -> (i32, i32) {
    %c0_i32 = arith.constant 0 : i32
    %c0_i32_0 = arith.constant 0 : i32
    %c0_i32_1 = arith.constant 0 : i32
    return %c0_i32, %c0_i32_0 : i32, i32
  }
  func.func @transform_3(%arg0: i32, %arg1: i32, %arg2: i32) -> (i32, i32, i32, i32) {
    %c0_i32 = arith.constant 0 : i32
    %c0_i32_0 = arith.constant 0 : i32
    %c0_i32_1 = arith.constant 0 : i32
    return %arg0, %arg1, %c0_i32, %c0_i32_0 : i32, i32, i32, i32
  }
  func.func @transform_4(%arg0: i32, %arg1: i32, %arg2: i32) -> (i32, i32, i32, i32) {
    %c0_i32 = arith.constant 0 : i32
    %c0_i32_0 = arith.constant 0 : i32
    %c0_i32_1 = arith.constant 0 : i32
    return %arg0, %arg1, %c0_i32, %c0_i32_0 : i32, i32, i32, i32
  }
  func.func @transform_5(%arg0: i32, %arg1: i32, %arg2: i32) -> (i32, i32, i32, i32) {
    %c0_i32 = arith.constant 0 : i32
    %c0_i32_0 = arith.constant 0 : i32
    %c0_i32_1 = arith.constant 0 : i32
    return %arg0, %arg1, %c0_i32, %c0_i32_0 : i32, i32, i32, i32
  }
  func.func @transform_6(%arg0: i32, %arg1: i32, %arg2: i32) -> (i32, i32, i32, i32) {
    %c0_i32 = arith.constant 0 : i32
    %c0_i32_0 = arith.constant 0 : i32
    %c0_i32_1 = arith.constant 0 : i32
    return %arg0, %arg1, %c0_i32, %c0_i32_0 : i32, i32, i32, i32
  }
  func.func @transform_7(%arg0: i32, %arg1: i32, %arg2: i32) -> (i32, i32, i32, i32) {
    %c0_i32 = arith.constant 0 : i32
    %c0_i32_0 = arith.constant 0 : i32
    %c0_i32_1 = arith.constant 0 : i32
    return %arg0, %arg1, %c0_i32, %c0_i32_0 : i32, i32, i32, i32
  }
}

</mosaic_0001>

<bundles_post_ra>
// kernel: weighted_dice_loss.1
= control target key start
LH: loop header
LB: loop body
LE: loop exit
PB: predicated region body
PF: predicated region fallthrough
CT: control target
= control target key end

     0   :  { %s981_s24 = smov 0   ;;  %s983_s25 = smov 0   ;;  %s1119_s0 = inlined_call_operand.vmem [shape: f32[2,4,256], index: 0, kind: input, shape index: {}]   ;;  %s1120_s1 = inlined_call_operand.vmem [shape: s32[2,1,256], index: 1, kind: input, shape index: {}]   ;;  %s1121_s2 = inlined_call_operand.vmem [shape: f32[4,1], index: 2, kind: input, shape index: {}]   ;;  %s1122_s3 = inlined_call_operand.vmem [shape: f32[2,1,4,1], index: 3, kind: output, shape index: {0}]   ;;  %s1123_s4 = inlined_call_operand.vmem [shape: f32[2,1,4,1], index: 4, kind: output, shape index: {1}]   ;;  %s1124_s5 = inlined_call_operand.vmem [shape: f32[2,1,4,1], index: 5, kind: output, shape index: {2}]   ;;  %s1125_s6 = inlined_call_operand.vmem [shape: f32[2,1,1,1], index: 6, kind: output, shape index: {3}]   ;;  %s1126_s7 = inlined_call_operand.vmem [shape: f32[2,1,1,1], index: 7, kind: output, shape index: {4}]  }
   0x1   :  { %s985_s26 = smov 0  }
   0x2 LB: > { %s37_s27 = sadd.s32 1, %s933_s25  ;;  %p867_p0 = scmp.ge.s32.totalorder %s937_s26, 1  ;;  %s937_s26 = sphi %s985_s26, %s18_s26   ;;  %s933_s25 = sphi %s983_s25, %s1128_s25   ;;  %s929_s24 = sphi %s981_s24, %s1127_s24  }
   0x3   : > { %p39_p1 = scmp.ge.s32.totalorder %s37_s27, 2  ;;  %p306_p2 = scmp.lt.s32.totalorder %s937_s26, 3 }
   0x5   : > { %s1130_s27 = smov (%p39_p1, %s37_s27), 0  ;;  %p307_p3 = pnand %p867_p0, %p306_p2 }
   0x6   : > { %p382_p4 = scmp.lt.s32.totalorder (!%p307_p3), %s929_s24, 1 }
   0x7   : > { %310 = sbr.rel (%p307_p3) target bundleno = 309 (0x135), region = 32 }
   0xc   : > { %v449_v0 = vld [vmem:[%s1121_s2] sm:$0xf]  ;;  %v939_v1 = vmov 0   ;;  %s1132_s24 = smov (!%p382_p4, %s929_s24), 1  ;;  %vm453_vm0 = vcmask 1043456   ;;  %vm440_vm1 = vcmask 3072   ;;  %v499_v21 = vlaneseq }
   0xd   : > { %903 = vset.pattern.permute.xlu0 %v939_v1  ;;  %s876_s30 = sshll.u32 %s1132_s24, 3  ;;  %v940_v18 = vmov 0.0   ;;  %s870_s11 = sshll.u32 %s1132_s24, 1  ;;  %vm444_vm4 = vcmask 0  }
   0xe   : > { %567 = vperm.xlu0 %903, %v449_v0   ;;  %s389_s10 = scalar_lea.vmem %s1119_s0, %s876_s30  ;;  %442 = vst.msk [vmem:[#allocation3] sm:$0xf] %vm440_vm1, %v940_v18  ;;  %441 = vst.msk [vmem:[#allocation2] sm:$0xf] %vm440_vm1, %v940_v18  ;;  %v1023_v23 = vshrl.u32 %v499_v21, 7  ;;  %s400_s14 = scalar_lea.vmem %s1120_s1, %s870_s11 }
   0xf   : > { %v447_v2 = vld [vmem:[%s389_s10] sm:$0xff]  ;;  %443 = vst.msk [vmem:[#allocation4] sm:$0xf] %vm440_vm1, %v940_v18  ;;  %s871_s15 = sshll.u32 %s1132_s24, 2  ;;  %s429_s8 = scalar_lea.vmem %s1125_s6, %s1132_s24 }
  0x10   : > { %v451_v3 = vcombine.high %v447_v2, %v447_v2  ;;  %v454_v4 = vsel %vm453_vm0, %v447_v2, -inf  ;;  %v503_v24 = vsub.s32 0, %v1023_v23  ;;  %v448_v25 = vld [vmem:[%s400_s14] sm:$0x3]  ;;  %v507_v26 = vsub.s32 1, %v1023_v23  ;;  %s416_s18 = scalar_lea.vmem %s1123_s4, %s871_s15  ;;  %s409_s21 = scalar_lea.vmem %s1122_s3, %s871_s15 }
  0x11   : > { %v455_v5 = vrot.slane %v454_v4, 4  ;;  %445 = vst.msk [vmem:[#allocation5] sm:$0x1] %vm444_vm4, %v940_v18  ;;  %446 = vst.msk [vmem:[#allocation6] sm:$0x1] %vm444_vm4, %v940_v18  ;;  %s423_s28 = scalar_lea.vmem %s1124_s5, %s871_s15  ;;  %s435_s11 = scalar_lea.vmem %s1126_s7, %s1132_s24 }
  0x12   : > { %v461_v6 = vsel %vm453_vm0, %v451_v3, -inf  ;;  %v1030_v27 = vrot.slane %v448_v25, %v503_v24  ;;  %v1032_v28 = vrot.slane %v448_v25, %v507_v26 }
  0x13   : > { %v456_v7 = vmax.f32 %v454_v4, %v455_v5  ;;  %v462_v8 = vrot.slane %v461_v6, 4 }
  0x14   : > { %vm509_vm2 = vcmp.eq.s32.totalorder %v1023_v23, %v1030_v27  ;;  %vm510_vm3 = vcmp.eq.s32.totalorder %v1023_v23, %v1032_v28 }
  0x15   : > { %v457_v9 = vrot.slane %v456_v7, 2  ;;  %v463_v10 = vmax.f32 %v461_v6, %v462_v8  ;;  %v549_v33 = vsel %vm509_vm2, %v447_v2, 0.0  ;;  %v550_v37 = vsel %vm510_vm3, %v451_v3, 0.0 }
  0x16   : > { %v551_v38 = vsel %vm453_vm0, %v549_v33, 0.0  ;;  %v558_v41 = vsel %vm453_vm0, %v550_v37, 0.0  ;;  %v534_v6 = vsel %vm509_vm2, 1.0, %v940_v18 }
  0x17   : > { %v458_v11 = vmax.f32 %v456_v7, %v457_v9  ;;  %v464_v12 = vrot.slane %v463_v10, 2  ;;  %v552_v44 = vrot.slane %v551_v38, 4  ;;  %v559_v47 = vrot.slane %v558_v41, 4 }
  0x18   : > { %v535_v7 = vsel %vm510_vm3, 1.0, %v940_v18 }
  0x19   : > { %v459_v13 = vrot.slane %v458_v11, 1  ;;  %v465_v14 = vmax.f32 %v463_v10, %v464_v12  ;;  %v553_v50 = vadd.f32 %v552_v44, %v551_v38  ;;  %v560_v52 = vadd.f32 %v559_v47, %v558_v41  ;;  %v525_v44 = vld [vmem:[#allocation3] sm:$0xf] }
  0x1b   : > { %v1010_v15 = vmax.f32 %v458_v11, %v459_v13  ;;  %v466_v16 = vrot.slane %v465_v14, 1  ;;  %v554_v53 = vrot.slane %v553_v50, 2  ;;  %v561_v54 = vrot.slane %v560_v52, 2 }
  0x1d   : > { %v1012_v17 = vmax.f32 %v465_v14, %v466_v16  ;;  %v555_v55 = vadd.f32 %v554_v53, %v553_v50  ;;  %v562_v56 = vadd.f32 %v561_v54, %v560_v52  ;;  %v536_v16 = vsel %vm453_vm0, %v534_v6, 0.0 }
  0x1f   : > { %v470_v19 = vcombine.low %v1010_v15, %v1012_v17  ;;  %v556_v57 = vrot.slane %v555_v55, 1  ;;  %v563_v59 = vrot.slane %v562_v56, 1 }
  0x21   : > { %v472_v20 = vsub.f32 %v447_v2, %v470_v19  ;;  %v557_v63 = vadd.f32 %v556_v57, %v555_v55  ;;  %v564_v4 = vadd.f32 %v563_v59, %v562_v56  ;;  %v537_v19 = vsel %vm453_vm0, %v535_v7, 0.0  ;;  %v590_v56 = vld [vmem:[#allocation5] sm:$0x1]  ;;  %v597_v59 = vld [vmem:[#allocation6] sm:$0x1] }
  0x22   : > { %v538_v24 = vadd.f32 %v537_v19, %v536_v16 }
  0x23   : > { %v473_v22 = vmul.f32 1.442695, %v472_v20 }
  0x25   : > { %905 = vpow2.f32 %v473_v22 }
  0x32   : > { %v906_v29 = vpop.eup %905 }
  0x33   : > { %v476_v30 = vcombine.high %v906_v29, %v906_v29  ;;  %v478_v31 = vsel %vm453_vm0, %v906_v29, 0.0 }
  0x34   : > { %v479_v32 = vrot.slane %v478_v31, 4 }
  0x35   : > { %v485_v34 = vsel %vm453_vm0, %v476_v30, 0.0 }
  0x36   : > { %v480_v35 = vadd.f32 %v479_v32, %v478_v31  ;;  %v486_v36 = vrot.slane %v485_v34, 4 }
  0x38   : > { %v481_v39 = vrot.slane %v480_v35, 2  ;;  %v487_v40 = vadd.f32 %v486_v36, %v485_v34 }
  0x3a   : > { %v482_v42 = vadd.f32 %v481_v39, %v480_v35  ;;  %v488_v43 = vrot.slane %v487_v40, 2 }
  0x3c   : > { %v483_v45 = vrot.slane %v482_v42, 1  ;;  %v489_v46 = vadd.f32 %v488_v43, %v487_v40 }
  0x3e   : > { %v484_v48 = vadd.f32 %v483_v45, %v482_v42  ;;  %v490_v49 = vrot.slane %v489_v46, 1  ;;  %v511_v45 = vld [vmem:[#allocation2] sm:$0xf] }
  0x40   : > { %v491_v51 = vadd.f32 %v490_v49, %v489_v46  ;;  %907 = vrcp.f32 %v484_v48  ;;  %v533_v49 = vld [vmem:[#allocation4] sm:$0xf] }
  0x41   : > { %909 = vlog2.f32 %v484_v48 }
  0x42   : > { %911 = vrcp.f32 %v491_v51 }
  0x43   : > { %913 = vlog2.f32 %v491_v51 }
  0x4d   : > { %v908_v58 = vpop.eup %907 }
  0x4e   : > { %v910_v60 = vpop.eup %909 }
  0x4f   : > { %v912_v61 = vpop.eup %911  ;;  %v544_v62 = vmul.f32 0.6931472, %v910_v60 }
  0x50   : > { %v914_v0 = vpop.eup %913  ;;  %v496_v1 = vcombine.low %v908_v58, %v912_v61 }
  0x51   : > { %v546_v2 = vmul.f32 0.6931472, %v914_v0  ;;  %v547_v3 = vadd.f32 %v544_v62, %v1010_v15 }
  0x52   : > { %v498_v5 = vmul.f32 %v906_v29, %v496_v1 }
  0x53   : > { %v548_v8 = vadd.f32 %v546_v2, %v1012_v17  ;;  %v586_v9 = vsub.f32 %v547_v3, %v557_v63 }
  0x54   : > { %v513_v10 = vcombine.high %v498_v5, %v498_v5  ;;  %v526_v11 = vsel %vm453_vm0, %v498_v5, 0.0  ;;  %v515_v12 = vsel %vm509_vm2, %v498_v5, 0.0 }
  0x55   : > { %v587_v13 = vsub.f32 %v548_v8, %v564_v4  ;;  %v517_v14 = vsel %vm453_vm0, %v515_v12, 0.0 }
  0x56   : > { %v527_v15 = vsel %vm453_vm0, %v513_v10, 0.0  ;;  %v516_v17 = vsel %vm510_vm3, %v513_v10, 0.0 }
  0x57   : > { %v528_v20 = vadd.f32 %v527_v15, %v526_v11  ;;  %v518_v21 = vsel %vm453_vm0, %v516_v17, 0.0 }
  0x58   : > { %v519_v22 = vadd.f32 %v518_v21, %v517_v14 }
  0x59   : > { %529 = vadd.xlane.f32.xlu1 %v528_v20 }
  0x5a   : > { %520 = vadd.xlane.f32.xlu0 %v519_v22 }
  0x5d   : > { %539 = vadd.xlane.f32.xlu1 %v538_v24 }
  0x89   : > { %v568_v25 = vpop.permute.xlu0 %567 }
  0x8a   : > { %v570_v26 = vsel %vm509_vm2, %v568_v25, 0.0  ;;  %v571_v29 = vsel %vm510_vm3, %v568_v25, 0.0 }
  0x8b   : > { %v572_v30 = vsel %vm453_vm0, %v570_v26, 0.0  ;;  %v579_v31 = vsel %vm453_vm0, %v571_v29, 0.0 }
  0x8c   : > { %v573_v32 = vrot.slane %v572_v30, 4  ;;  %v580_v33 = vrot.slane %v579_v31, 4 }
  0x8e   : > { %v574_v34 = vadd.f32 %v573_v32, %v572_v30  ;;  %v581_v35 = vadd.f32 %v580_v33, %v579_v31 }
  0x90   : > { %v575_v36 = vrot.slane %v574_v34, 2  ;;  %v582_v37 = vrot.slane %v581_v35, 2 }
  0x92   : > { %v576_v18 = vadd.f32 %v575_v36, %v574_v34  ;;  %v583_v38 = vadd.f32 %v582_v37, %v581_v35 }
  0x94   : > { %v577_v39 = vrot.slane %v576_v18, 1  ;;  %v584_v40 = vrot.slane %v583_v38, 1 }
  0x96   : > { %v578_v27 = vadd.f32 %v577_v39, %v576_v18  ;;  %v585_v41 = vadd.f32 %v584_v40, %v583_v38 }
  0x98   : > { %v588_v42 = vmul.f32 %v586_v9, %v578_v27  ;;  %v589_v23 = vmul.f32 %v587_v13, %v585_v41  ;;  %v598_v43 = vadd.f32 %v585_v41, %v578_v27 }
  0x9a   : > { %v591_v28 = vadd.f32 %v589_v23, %v588_v42 }
  0x9c   : > { %592 = vadd.xlane.f32.xlu1 %v591_v28 }
  0xa0   : > { %599 = vadd.xlane.f32.xlu1 %v598_v43 }
  0xe2   : > { %v530_v46 = vpop.xlane.xlu1 %529 }
  0xe3   : > { %v531_v47 = vadd.f32 %v530_v46, %v525_v44  ;;  %v521_v48 = vpop.xlane.xlu0 %520 }
  0xe4   : > { %v522_v50 = vadd.f32 %v521_v48, %v511_v45 }
  0xe5   : > { %532 = vst.msk [vmem:[#allocation3] sm:$0xf] %vm440_vm1, %v531_v47 }
  0xe6   : > { %v540_v51 = vpop.xlane.xlu1 %539  ;;  %524 = vst.msk [vmem:[#allocation2] sm:$0xf] %vm440_vm1, %v522_v50 }
  0xe7   : > { %v541_v52 = vadd.f32 %v540_v51, %v533_v49 }
  0xe9   : > { %542 = vst.msk [vmem:[#allocation4] sm:$0xf] %vm440_vm1, %v541_v52 }
  0xec   : > { %v608_v53 = vld [vmem:[#allocation3] sm:$0xf] }
  0xed   : > { %609 = vst.msk [vmem:[%s416_s18] sm:$0xf] %vm440_vm1, %v608_v53  ;;  %v606_v54 = vld [vmem:[#allocation2] sm:$0xf] }
  0xee   : > { %607 = vst.msk [vmem:[%s409_s21] sm:$0xf] %vm440_vm1, %v606_v54 }
  0xf0   : > { %v610_v55 = vld [vmem:[#allocation4] sm:$0xf] }
  0xf1   : > { %611 = vst.msk [vmem:[%s423_s28] sm:$0xf] %vm440_vm1, %v610_v55 }
 0x125   : > { %v593_v57 = vpop.xlane.xlu1 %592 }
 0x126   : > { %v594_v58 = vadd.f32 %v593_v57, %v590_v56 }
 0x128   : > { %596 = vst.msk [vmem:[#allocation5] sm:$0x1] %vm444_vm4, %v594_v58 }
 0x129   : > { %v600_v60 = vpop.xlane.xlu1 %599 }
 0x12a   : > { %v601_v61 = vadd.f32 %v600_v60, %v597_v59 }
 0x12c   : > { %602 = vst.msk [vmem:[#allocation6] sm:$0x1] %vm444_vm4, %v601_v61 }
 0x12f   : > { %v612_v62 = vld [vmem:[#allocation5] sm:$0x1] }
 0x130   : > { %613 = vst.msk [vmem:[%s429_s8] sm:$0x1] %vm444_vm4, %v612_v62 }
 0x133   : > { %v614_v63 = vld [vmem:[#allocation6] sm:$0x1] }
 0x134   : > { %615 = vst.msk [vmem:[%s435_s11] sm:$0x1] %vm444_vm4, %v614_v63 }
 0x135 PF: > { %s18_s26 = sadd.s32 1, %s937_s26   ;;  %s1127_s24 = smov %s933_s25 }
 0x136   : > { %p15_p5 = scmp.ge.s32.totalorder %s18_s26, 4   ;;  %s1128_s25 = smov %s1130_s27 }
 0x138   :  { %17 = sbr.rel (!%p15_p5) target bundleno = 2 (0x2), region = 121 }

</bundles_post_ra>
